<compile_context>
chip_gen: v7x
topology: tpu7x:2x2x1
jax: 0.10.0
libtpu: 0.0.40
codegen_flags: <defaults>
</compile_context>

<pallas_src>
import jax
import jax.numpy as jnp
from jax import lax
from jax.experimental import pallas as pl
from jax.experimental.pallas import tpu as pltpu

_MIB = 1024 * 1024


def _round_up(x, m):
    return ((x + m - 1) // m) * m


def _sublane_multiple(itemsize):
    # Packed-sublane row multiple: f32 -> 8, bf16/f16 -> 16, int8/fp8 -> 32.
    return max(8, 32 // max(int(itemsize), 1))


def _vmem_capacity_bytes():
    try:
        return int(pltpu.get_tpu_info().vmem_capacity_bytes)
    except Exception:
        return 64 * _MIB  # conservative default: v7x has 64 MiB per TensorCore


def _linear_kernel(z_ref, w_ref, b_ref, o_ref):
    # out = z @ W + b.  Operands arrive in their storage dtype (f32 or bf16),
    # contraction accumulates in f32 on the MXU; no full-tile VPU upcast.
    acc = lax.dot_general(
        z_ref[...],
        w_ref[...],
        dimension_numbers=(((1,), (0,)), ((), ())),
        preferred_element_type=jnp.float32,
    )
    o_ref[...] = acc + b_ref[...]


def _pick_tile_rows(n_rows, d_eff, h_eff, z_itemsize, vmem_cap, max_tile_rows=None):
    """Pick the row-tile size TM with padding-aware VMEM accounting."""
    sub = _sublane_multiple(z_itemsize)
    d_pad = _round_up(d_eff, 128)            # lane padding of the activation
    h_pad = _round_up(h_eff, 128)            # lane padding of the output
    # Double-buffered activation + output bytes per row (padded layout).
    per_row = 2 * d_pad * z_itemsize + 2 * h_pad * 4
    # VMEM-resident weight + bias (f32 worst case), padded.
    resident = _round_up(d_eff, 8) * h_pad * 4 + 8 * h_pad * 4
    # Keep the total tile footprint well under the per-TC physical capacity
    # (v7x: 64 MiB, v5e/v6e: 128 MiB), leaving headroom for compiler scratch.
    budget = int(vmem_cap * 0.5) - resident
    tm_vmem = max(budget // max(per_row, 1), sub)
    # Byte-sized target: ~8 MiB of activation per tile so per-step DMA time
    # dwarfs the ~0.35 us fixed grid-step overhead (no hard row cap).
    tm_bytes = max((8 * _MIB) // max(d_pad * z_itemsize, 1), sub)
    tm = int(min(tm_vmem, tm_bytes))
    if max_tile_rows is not None:
        tm = min(tm, int(max_tile_rows))
    if tm >= n_rows:
        # For big-enough inputs still emit >= 2 grid steps so the "parallel"
        # row axis can shard across v7x's two TensorCores.
        if n_rows >= 2 * sub and max_tile_rows is None:
            half = _round_up(pl.cdiv(n_rows, 2), sub)
            return int(min(half, n_rows))
        return int(n_rows)  # single full-extent block is legal
    return int(max(sub, (tm // sub) * sub))


def _linear_probe_call(z, w, b2, max_tile_rows=None):
    """out[N, Hp] = z[N, Dp] @ w[Dp, Hp] + b2[1, Hp] (one pallas_call)."""
    n, dp = z.shape
    hp = w.shape[1]

    vmem_cap = _vmem_capacity_bytes()
    tm = _pick_tile_rows(n, dp, hp, z.dtype.itemsize, vmem_cap, max_tile_rows)
    grid = (pl.cdiv(n, tm),)

    # Padding-aware VMEM requirement for the limit hint.
    sub_z = _sublane_multiple(z.dtype.itemsize)
    d_lane = _round_up(dp, 128)
    h_lane = _round_up(hp, 128)
    vmem_need = (
        2 * _round_up(tm, sub_z) * d_lane * z.dtype.itemsize   # dbl-buffered activations
        + 2 * _round_up(tm, 8) * h_lane * 4                    # dbl-buffered output
        + _round_up(dp, _sublane_multiple(w.dtype.itemsize)) * h_lane * w.dtype.itemsize
        + 8 * h_lane * 4                                       # bias
    )
    vmem_limit = int(min(vmem_cap, max(vmem_need + 16 * _MIB, 32 * _MIB)))

    cost = pl.CostEstimate(
        flops=2 * n * dp * hp,
        transcendentals=0,
        bytes_accessed=(n * dp * z.dtype.itemsize      # activations read
                        + dp * hp * w.dtype.itemsize   # weight read
                        + hp * 4                       # bias read
                        + n * hp * 4),                 # output write
    )

    return pl.pallas_call(
        _linear_kernel,
        out_shape=jax.ShapeDtypeStruct((n, hp), jnp.float32),
        grid_spec=pltpu.PrefetchScalarGridSpec(
            num_scalar_prefetch=0,
            grid=grid,
            in_specs=[
                pl.BlockSpec((tm, dp), lambda i: (i, 0)),   # activations: row-tiled
                pl.BlockSpec((dp, hp), lambda i: (0, 0)),   # weight: VMEM-resident
                pl.BlockSpec((1, hp), lambda i: (0, 0)),    # bias: VMEM-resident
            ],
            out_specs=pl.BlockSpec((tm, hp), lambda i: (i, 0)),
        ),
        compiler_params=pltpu.CompilerParams(
            dimension_semantics=("parallel",),   # row tiles shard across v7x's 2 TCs
            vmem_limit_bytes=vmem_limit,
        ),
        cost_estimate=cost,
    )(z, w, b2)


def classifier_forward(z_list, weight, bias, max_tile_rows=None):
    """Pallas implementation of ClassifierModel.forward.

    z_list : list/tuple of arrays (or a single array), each [Ni, latent_dim]
    weight : [num_heads, latent_dim]  (PyTorch nn.Linear layout)
    bias   : [num_heads]
    returns: [sum(Ni), num_heads] float32
    """
    if not isinstance(z_list, (list, tuple)):
        z_list = [z_list]
    segs = [jnp.asarray(s) for s in z_list]
    # torch.cat(z): one cheap concat, then a single fused pallas_call
    # (no per-segment launches, per-shape compiles, or re-DMA of the weight).
    z = segs[0] if len(segs) == 1 else jnp.concatenate(segs, axis=0)
    # torch: z.float() only when z is not floating point.
    if not jnp.issubdtype(z.dtype, jnp.floating):
        z = z.astype(jnp.float32)

    n, d = z.shape
    weight = jnp.asarray(weight, jnp.float32)
    bias = jnp.asarray(bias, jnp.float32)
    h = weight.shape[0]

    # Feed the MXU operands at the activation's native width (bf16/f16 stay
    # narrow, f32 accumulation happens in-kernel); otherwise f32.
    narrow = (jnp.dtype(jnp.bfloat16), jnp.dtype(jnp.float16))
    op_dtype = z.dtype if z.dtype in narrow else jnp.float32
    z = z.astype(op_dtype)

    # Lane-dense packing: view [N, D] as [N/P, P*D] with P = 128 // D (free
    # row-major reshape) and multiply by a block-diagonal [P*D, P*H] copy of
    # W.T, so activation tiles are 128 lanes wide and the output is P*H lanes.
    pack = 128 // d if (d < 128 and 128 % d == 0) else 1

    w_t = weight.T                                   # [D, H]; 512 B, free transpose
    if pack > 1:
        pad_rows = (-n) % pack
        if pad_rows:
            z = jnp.concatenate([z, jnp.zeros((pad_rows, d), z.dtype)], axis=0)
        z_in = z.reshape((n + pad_rows) // pack, pack * d)
        w_in = jnp.kron(jnp.eye(pack, dtype=jnp.float32), w_t)   # block-diag [P*D, P*H]
        b_in = jnp.tile(bias, pack).reshape(1, pack * h)
    else:
        z_in = z
        w_in = w_t
        b_in = bias.reshape(1, h)
    w_in = w_in.astype(op_dtype)

    out = _linear_probe_call(z_in, w_in, b_in, max_tile_rows)
    if pack > 1:
        out = out.reshape(-1, h)[:n]
    return out


if __name__ == "__main__":
    # Synthetic config: latent_dim=32, num_outs=4 -> num_heads = max(4, 2) = 4
    latent_dim = 32
    num_heads = 4

    key = jax.random.PRNGKey(0)
    k_w, k_b, k_z1, k_z2, k_z3, k_z4 = jax.random.split(key, 6)

    # Parameters follow nn.Linear(latent_dim, num_heads): weight [H, D], bias [H].
    weight = jax.random.normal(k_w, (num_heads, latent_dim), jnp.float32) * 0.02
    bias = jax.random.normal(k_b, (num_heads,), jnp.float32) * 0.01

    # --- Test 1: forward on a list of small f32 segments (torch.cat path). ---
    z1 = jax.random.normal(k_z1, (2, latent_dim), jnp.float32)
    z2 = jax.random.normal(k_z2, (2, latent_dim), jnp.float32)
    out = jax.block_until_ready(classifier_forward([z1, z2], weight, bias))
    ref = jnp.concatenate([z1, z2], axis=0) @ weight.T + bias
    assert out.shape == (4, num_heads)
    assert jnp.allclose(out, ref, atol=1e-5, rtol=1e-5)

    # --- Test 2: larger single segment, forced multi-step row tiling. ---
    z3 = jax.random.normal(k_z3, (48, latent_dim), jnp.float32)
    out3 = jax.block_until_ready(
        classifier_forward([z3], weight, bias, max_tile_rows=8))  # packed grid=(2,)
    ref3 = z3 @ weight.T + bias
    assert out3.shape == (48, num_heads)
    assert jnp.allclose(out3, ref3, atol=1e-5, rtol=1e-5)

    # --- Test 3: integer activations (torch's conditional .float() path) with
    # a row count not divisible by the lane-packing factor. ---
    z4 = jax.random.randint(k_z4, (6, latent_dim), -5, 5, jnp.int32)
    out4 = jax.block_until_ready(classifier_forward([z4], weight, bias))
    ref4 = z4.astype(jnp.float32) @ weight.T + bias
    assert out4.shape == (6, num_heads)
    assert jnp.allclose(out4, ref4, atol=1e-5, rtol=1e-5)

    print("KERNEL_OK")
</pallas_src>

<mosaic_0001>
module attributes {stable_mosaic.version = 11 : i64} {
  func.func @_linear_kernel(%arg0: i32, %arg1: memref<1x128xf32, #tpu.memory_space<vmem>>, %arg2: memref<128x16xf32, #tpu.memory_space<vmem>>, %arg3: memref<1x16xf32, #tpu.memory_space<vmem>>, %arg4: memref<1x16xf32, #tpu.memory_space<vmem>>) attributes {dimension_semantics = [#tpu.dimension_semantics<parallel>], iteration_bounds = array<i64: 1>, scalar_prefetch = 0 : i64, scratch_operands = 0 : i64, tpu.core_type = #tpu.core_type<tc>, window_params = [{transform_indices = @transform_0, window_bounds = array<i64: 1, 128>}, {pipeline_mode = #tpu.pipeline_mode<synchronous>, transform_indices = @transform_1, window_bounds = array<i64: 128, 16>}, {pipeline_mode = #tpu.pipeline_mode<synchronous>, transform_indices = @transform_2, window_bounds = array<i64: 1, 16>}, {transform_indices = @transform_3, window_bounds = array<i64: 1, 16>}]} {
    %c0 = arith.constant 0 : index
    %c0_0 = arith.constant 0 : index
    %0 = vector.load %arg1[%c0, %c0_0] : memref<1x128xf32, #tpu.memory_space<vmem>>, vector<1x128xf32>
    %c0_1 = arith.constant 0 : index
    %c0_2 = arith.constant 0 : index
    %1 = vector.load %arg2[%c0_1, %c0_2] : memref<128x16xf32, #tpu.memory_space<vmem>>, vector<128x16xf32>
    %cst = arith.constant dense<0.000000e+00> : vector<1x16xf32>
    %2 = tpu.matmul %0, %1, %cst {dimension_numbers = #tpu.dot_dimension_numbers<[1], [0], [0], [1], [0, 0, 1, 1], [], []>} : vector<1x128xf32>, vector<128x16xf32>, vector<1x16xf32> -> vector<1x16xf32>
    %c0_3 = arith.constant 0 : index
    %c0_4 = arith.constant 0 : index
    %3 = vector.load %arg3[%c0_3, %c0_4] : memref<1x16xf32, #tpu.memory_space<vmem>>, vector<1x16xf32>
    %4 = arith.addf %2, %3 : vector<1x16xf32>
    %c0_5 = arith.constant 0 : index
    %c0_6 = arith.constant 0 : index
    %5 = vector.load %arg4[%c0_5, %c0_6] : memref<1x16xf32, #tpu.memory_space<vmem>>, vector<1x16xf32>
    tpu.vector_store %arg4[%c0_5, %c0_6], %4 {strides = array<i32>} : memref<1x16xf32, #tpu.memory_space<vmem>>, vector<1x16xf32>,
    return
  }
  func.func @transform_0(%arg0: i32) -> (i32, i32) {
    %c0_i32 = arith.constant 0 : i32
    %c0_i32_0 = arith.constant 0 : i32
    return %arg0, %c0_i32 : i32, i32
  }
  func.func @transform_1(%arg0: i32) -> (i32, i32) {
    %c0_i32 = arith.constant 0 : i32
    %c0_i32_0 = arith.constant 0 : i32
    %c0_i32_1 = arith.constant 0 : i32
    return %c0_i32, %c0_i32_0 : i32, i32
  }
  func.func @transform_2(%arg0: i32) -> (i32, i32) {
    %c0_i32 = arith.constant 0 : i32
    %c0_i32_0 = arith.constant 0 : i32
    %c0_i32_1 = arith.constant 0 : i32
    return %c0_i32, %c0_i32_0 : i32, i32
  }
  func.func @transform_3(%arg0: i32) -> (i32, i32) {
    %c0_i32 = arith.constant 0 : i32
    %c0_i32_0 = arith.constant 0 : i32
    return %arg0, %c0_i32 : i32, i32
  }
}

</mosaic_0001>

<bundles_post_ra>
// kernel: tpu_custom_call.1
= control target key start
LH: loop header
LB: loop body
LE: loop exit
PB: predicated region body
PF: predicated region fallthrough
CT: control target
= control target key end

     0   :  { %v223_v3 = vmov 0.0|0.0   ;;  %vm224_vm0 = vmmov 0   ;;  %v225_v6 = vmov 0.0   ;;  %s313_s0 = inlined_call_operand.vmem [shape: f32[1,128], index: 0, kind: input, shape index: {}]   ;;  %s314_s1 = inlined_call_operand.vmem [shape: f32[128,16], index: 1, kind: input, shape index: {}]   ;;  %s315_s2 = inlined_call_operand.vmem [shape: f32[1,16], index: 2, kind: input, shape index: {}]   ;;  %s316_s3 = inlined_call_operand.hbm [shape: f32[1,16], index: 3, kind: output, shape index: {}]  }
   0x1   :  { %v16_v0 = vld [vmem:[%s314_s1] sm:$0xff]  ;;  %v17_v1 = vld [vmem:[%s314_s1 + $0x8] sm:$0xff]  ;;  %v18_v2 = vld [vmem:[%s314_s1 + $0x10] sm:$0xff]  ;;  %171 = vmatprep.subr.bf16.mxu0 %v223_v3  ;;  %168 = vmatprep.mubr.msk.f32.mxu0 %vm224_vm0, %v225_v6 }
   0x2   :  { %v172_v4 = vpack.c.bf16 %v17_v1, %v16_v0  ;;  %v19_v5 = vld [vmem:[%s314_s1 + $0x18] sm:$0xff]  ;;  %v20_v8 = vld [vmem:[%s314_s1 + $0x20] sm:$0xff]  ;;  %v21_v9 = vld [vmem:[%s314_s1 + $0x28] sm:$0xff] }
   0x3   :  { %v175_v7 = vpack.c.bf16 %v19_v5, %v18_v2 }
   0x4   :  { %173 = vmatpush3.bf16.msra.mxu0 %v172_v4 }
   0x5   :  { %174 = vmatprep.subr.bf16.mxu0 %v223_v3 }
   0x6   :  { %8 = vsyncpa [#allocation3], 0  ;;  %v178_v10 = vpack.c.bf16 %v21_v9, %v20_v8  ;;  %v22_v11 = vld [vmem:[%s314_s1 + $0x30] sm:$0xff]  ;;  %v23_v12 = vld [vmem:[%s314_s1 + $0x38] sm:$0xff]  ;;  %s226_s21 = smov [#allocation2]   ;;  %vm103_vm1 = vcmask 122880  }
   0x7   :  { %v181_v13 = vpack.c.bf16 %v23_v12, %v22_v11  ;;  %v24_v14 = vld [vmem:[%s314_s1 + $0x40] sm:$0xff]  ;;  %v25_v15 = vld [vmem:[%s314_s1 + $0x48] sm:$0xff]  ;;  %v26_v17 = vld [vmem:[%s314_s1 + $0x50] sm:$0xff]  ;;  %s111_s22 = sshll.u32 %s226_s21, 4  ;;  %s112_s22 = int_to_ptr.vmem [resolvable:$true] %s111_s22 }
   0x8   :  { %176 = vmatpush3.bf16.msra.mxu0 %v175_v7  ;;  %v184_v16 = vpack.c.bf16 %v25_v15, %v24_v14  ;;  %v27_v18 = vld [vmem:[%s314_s1 + $0x58] sm:$0xff]  ;;  %v28_v20 = vld [vmem:[%s314_s1 + $0x60] sm:$0xff]  ;;  %v29_v21 = vld [vmem:[%s314_s1 + $0x68] sm:$0xff]  ;;  %s203_s23 = scalar_lea.vmem %s112_s22, 32  ;;  %p204_p1 = scmp.lt.s32.totalorder %s112_s22, %s112_s22 }
   0x9   :  { %177 = vmatprep.subr.bf16.mxu0 %v223_v3  ;;  %v187_v19 = vpack.c.bf16 %v27_v18, %v26_v17  ;;  %v190_v22 = vpack.c.bf16 %v29_v21, %v28_v20  ;;  %v30_v23 = vld [vmem:[%s314_s1 + $0x70] sm:$0xff]  ;;  %v31_v24 = vld [vmem:[%s314_s1 + $0x78] sm:$0xff]  ;;  %v15_v26 = vld [vmem:[%s313_s0] sm:$0x1]  ;;  %s199_s1 = scalar_lea.vmem %s112_s22, 16 }
   0xa   :  { %v193_v25 = vpack.c.bf16 %v31_v24, %v30_v23  ;;  %v32_v27 = vld [vmem:[%s315_s2] sm:$0x1]  ;;  %p200_p0 = scmp.ne.s32.totalorder %s112_s22, %s199_s1  ;;  %p205_p2 = scmp.lt.s32.totalorder %s203_s23, %s199_s1 }
   0xc   :  { %179 = vmatpush3.bf16.msra.mxu0 %v178_v10  ;;  %p206_p3 = por %p205_p2, %p204_p1 }
   0xd   :  { %180 = vmatprep.subr.bf16.mxu0 %v223_v3 }
   0xe   :  { %p207_p4 = pnand %p206_p3, %p200_p0 }
  0x10   :  { %182 = vmatpush3.bf16.msra.mxu0 %v181_v13 }
  0x11   :  { %183 = vmatprep.subr.bf16.mxu0 %v223_v3 }
  0x14   :  { %185 = vmatpush3.bf16.msra.mxu0 %v184_v16 }
  0x15   :  { %186 = vmatprep.subr.bf16.mxu0 %v223_v3 }
  0x18   :  { %188 = vmatpush3.bf16.msra.mxu0 %v187_v19 }
  0x19   :  { %189 = vmatprep.subr.bf16.mxu0 %v223_v3 }
  0x1c   :  { %191 = vmatpush3.bf16.msra.mxu0 %v190_v22 }
  0x1d   :  { %192 = vmatprep.subr.bf16.mxu0 %v223_v3 }
  0x20   :  { %194 = vmatpush3.bf16.msra.mxu0 %v193_v25 }
  0x23   :  { %169 = vmatmul.mubr.f32.vlgmr.msra.gmra.mrb[0].mxu0 %v15_v26 }
  0xf6   :  { %v99_v28 = vpop.f32.mrb[0].mxu0 }
  0xf7   :  { %v100_v29 = vadd.f32 %v99_v28, %v32_v27  ;;  %v170_v30 = vpop.f32.mrb[1].mxu0 }
  0xf9   :  { %104 = vst.msk [vmem:[#allocation2] sm:$0x1] %vm103_vm1, %v100_v29 }
  0xfa   :  { %210 = shalt.err (!%p207_p4)
}
  0xfb   :  { %s211_s2 = scalar_lea.hbm %s316_s3, 16 }
  0xfc   :  { %p212_p5 = scmp.ne.s32.totalorder %s316_s3, %s211_s2  ;;  %p215_p6 = scmp.lt.u32.totalorder %s211_s2, %s316_s3 }
  0xfe   :  { %p217_p7 = pnand %p215_p6, %p212_p5 }
 0x100   :  { %220 = shalt.err (!%p217_p7)
}
 0x101   :  { %114 = dma.vmem_to_hbm [thread:$0]  %s112_s22, 16, %s316_s3, [#allocation3]  }
 0x102   :  { %221 = dma.done.wait [#allocation3], 16  }
 0x103   :  { %222 = vsyncadd [#allocation3], 4294967280 }
 0x104   :  { %118 = vsyncpa [#allocation3], 1 }

</bundles_post_ra>
